<compile_context>
chip_gen: v7x
topology: tpu7x:2x2x1
jax: 0.10.0
libtpu: 0.0.40
codegen_flags: <defaults>
</compile_context>

<pallas_src>
import functools

import jax
import jax.numpy as jnp
from jax.experimental import pallas as pl
from jax.experimental.pallas import tpu as pltpu


INPUT_DIM_X = 2
INPUT_DIM_U = 4
OUTPUT_DIM_H = 2

# (name, in_dim, out_dim) for every nn.Linear in the PyTorch module.
LAYER_DEFS = [
    ("W0u",   INPUT_DIM_U, 12),
    ("W0h_x", INPUT_DIM_X, 12),
    ("W1xu",  12, 24),
    ("W1h_u", 12, 24),
    ("W1u",   INPUT_DIM_U, 24),
    ("W1h_x", 12, 24),
    ("W2xu",  24, 48),
    ("W2h_u", 24, 48),
    ("W2u",   INPUT_DIM_U, 48),
    ("W2h_x", 24, 48),
    ("W3xu",  48, 12),
    ("W3h_u", 48, 12),
    ("W3u",   INPUT_DIM_U, 12),
    ("W3h_x", 48, 12),
    ("W4xu",  12, OUTPUT_DIM_H),
    ("W4h_u", 12, OUTPUT_DIM_H),
    ("W4u",   INPUT_DIM_U, OUTPUT_DIM_H),
]


def _init_params(key):
    """PyTorch-style init: weight (out, in), bias (out,), U(-1/sqrt(in), 1/sqrt(in))."""
    params = {}
    for i, (name, d_in, d_out) in enumerate(LAYER_DEFS):
        kw, kb = jax.random.split(jax.random.fold_in(key, i))
        bound = 1.0 / (d_in ** 0.5)
        w = jax.random.uniform(kw, (d_out, d_in), jnp.float32, -bound, bound)
        b = jax.random.uniform(kb, (d_out,), jnp.float32, -bound, bound)
        params[name] = (w, b)
    return params


# ----------------------------------------------------------------------------
# Weight packing: 17 Linears -> 9 packed stage matrices.
#
# Input slab (8 sublanes, shared by all stages as "u_one"):
#   rows 0:4 = u^T, row 4 = 1.0 (bias lane), rows 5:7 = x^T, row 7 = pad
# Stage outputs z_i (sublane axis): [h_u_i (pad8) | h_x_i (pad8)].
# Stage i >= 1 splits into:
#   fresh matmul: W_fresh_i @ [h_x*h_u (pad8) | u_one (8)]   (carries xu, u, biases)
#   carry matmul: W_carry_i @ z_{i-1}                        (carries h_u, h_x weights)
# Padded rows carry zero weights + zero bias -> stay exactly zero after ReLU.
# ----------------------------------------------------------------------------
def pack_params(params):
    def W(name):
        return params[name][0]

    def b(name):
        return params[name][1]

    # Stage 0: K=8 ([u|1|x|pad]), N=32 ([h_u0 12->16 | h_x0 12->16])
    w0 = jnp.zeros((32, 8), jnp.float32)
    w0 = w0.at[0:12, 0:4].set(W("W0u"))
    w0 = w0.at[0:12, 4].set(b("W0u"))
    w0 = w0.at[16:28, 5:7].set(W("W0h_x"))
    w0 = w0.at[16:28, 4].set(b("W0h_x"))

    # Stage 1: fresh K=24 ([prod 16 | u_one 8]), carry K=32 (z0), N=48
    w1f = jnp.zeros((48, 24), jnp.float32)
    w1f = w1f.at[0:24, 0:12].set(W("W1xu"))
    w1f = w1f.at[0:24, 16:20].set(W("W1u"))
    w1f = w1f.at[0:24, 20].set(b("W1xu") + b("W1h_u") + b("W1u"))
    w1f = w1f.at[24:48, 20].set(b("W1h_x"))
    w1c = jnp.zeros((48, 32), jnp.float32)
    w1c = w1c.at[0:24, 0:12].set(W("W1h_u"))
    w1c = w1c.at[24:48, 16:28].set(W("W1h_x"))

    # Stage 2: fresh K=32 ([prod 24 | u_one 8]), carry K=48 (z1), N=96
    w2f = jnp.zeros((96, 32), jnp.float32)
    w2f = w2f.at[0:48, 0:24].set(W("W2xu"))
    w2f = w2f.at[0:48, 24:28].set(W("W2u"))
    w2f = w2f.at[0:48, 28].set(b("W2xu") + b("W2h_u") + b("W2u"))
    w2f = w2f.at[48:96, 28].set(b("W2h_x"))
    w2c = jnp.zeros((96, 48), jnp.float32)
    w2c = w2c.at[0:48, 0:24].set(W("W2h_u"))
    w2c = w2c.at[48:96, 24:48].set(W("W2h_x"))

    # Stage 3: fresh K=56 ([prod 48 | u_one 8]), carry K=96 (z2), N=32
    w3f = jnp.zeros((32, 56), jnp.float32)
    w3f = w3f.at[0:12, 0:48].set(W("W3xu"))
    w3f = w3f.at[0:12, 48:52].set(W("W3u"))
    w3f = w3f.at[0:12, 52].set(b("W3xu") + b("W3h_u") + b("W3u"))
    w3f = w3f.at[16:28, 52].set(b("W3h_x"))
    w3c = jnp.zeros((32, 96), jnp.float32)
    w3c = w3c.at[0:12, 0:48].set(W("W3h_u"))
    w3c = w3c.at[16:28, 48:96].set(W("W3h_x"))

    # Stage 4: fresh K=24 ([prod 16 | u_one 8]), carry K=32 (z3), N=8 (h_u4 2->8)
    w4f = jnp.zeros((8, 24), jnp.float32)
    w4f = w4f.at[0:2, 0:12].set(W("W4xu"))
    w4f = w4f.at[0:2, 16:20].set(W("W4u"))
    w4f = w4f.at[0:2, 20].set(b("W4xu") + b("W4h_u") + b("W4u"))
    w4c = jnp.zeros((8, 32), jnp.float32)
    w4c = w4c.at[0:2, 0:12].set(W("W4h_u"))

    return [w0, w1f, w1c, w2f, w2c, w3f, w3c, w4f, w4c]


# ----------------------------------------------------------------------------
# Kernel: whole PICNN forward on one (features, batch_tile) tile; 9 matmuls.
# Previous stage's z_i is consumed in place by the carry matmul -> only the
# small [prod | u_one] slab is re-assembled per stage.
# ----------------------------------------------------------------------------
def picnn_kernel(inp_ref, w0_ref, w1f_ref, w1c_ref, w2f_ref, w2c_ref,
                 w3f_ref, w3c_ref, w4f_ref, w4c_ref, out_ref):
    relu = lambda t: jnp.maximum(t, 0.0)
    dot = lambda w, h: jnp.dot(w, h, preferred_element_type=jnp.float32)

    u_one = inp_ref[...]                               # (8, Bt): [u | 1 | x | pad]

    z0 = relu(dot(w0_ref[...], u_one))                 # (32, Bt)
    f1 = jnp.concatenate([z0[16:32, :] * z0[0:16, :], u_one], axis=0)   # (24, Bt)

    z1 = relu(dot(w1f_ref[...], f1) + dot(w1c_ref[...], z0))            # (48, Bt)
    f2 = jnp.concatenate([z1[24:48, :] * z1[0:24, :], u_one], axis=0)   # (32, Bt)

    z2 = relu(dot(w2f_ref[...], f2) + dot(w2c_ref[...], z1))            # (96, Bt)
    f3 = jnp.concatenate([z2[48:96, :] * z2[0:48, :], u_one], axis=0)   # (56, Bt)

    z3 = relu(dot(w3f_ref[...], f3) + dot(w3c_ref[...], z2))            # (32, Bt)
    f4 = jnp.concatenate([z3[16:32, :] * z3[0:16, :], u_one], axis=0)   # (24, Bt)

    z4 = relu(dot(w4f_ref[...], f4) + dot(w4c_ref[...], z3))            # (8, Bt)

    out_ref[...] = z4[0:OUTPUT_DIM_H, :].astype(out_ref.dtype)


def _round_up(n, m):
    return ((n + m - 1) // m) * m


def _pick_batch_tile(b_padded):
    """Generation-aware batch tile (b_padded is already a multiple of 128)."""
    try:
        kind = jax.devices()[0].device_kind.lower()
    except Exception:  # pragma: no cover - defensive
        kind = ""
    if "v7" in kind and b_padded >= 256:
        # v7x: 2 TensorCores -> aim for 2 balanced "parallel" grid steps.
        tile = _round_up(b_padded // 2, 128)
    else:
        # v5e/v6e: single TensorCore -> one big tile, no per-step overhead.
        tile = b_padded
    return min(tile, 4096)


# ----------------------------------------------------------------------------
# Wrapper
# ----------------------------------------------------------------------------
@jax.jit
def picnn_forward(x, u, packed):
    B = x.shape[0]
    b128 = _round_up(max(B, 1), 128)
    batch_tile = _pick_batch_tile(b128)
    b_final = _round_up(b128, batch_tile)        # no partial (masked) blocks
    grid = (b_final // batch_tile,)

    # Lane-dense 8-sublane input slab, built with one concat + one pad.
    inp = jnp.concatenate(
        [u.T.astype(jnp.float32),
         jnp.ones((1, B), jnp.float32),
         x.T.astype(jnp.float32),
         jnp.zeros((1, B), jnp.float32)],
        axis=0)                                   # (8, B)
    if b_final != B:
        inp = jnp.pad(inp, ((0, 0), (0, b_final - B)))

    inp_spec = pl.BlockSpec((8, batch_tile), lambda i: (0, i))
    out_spec = pl.BlockSpec((OUTPUT_DIM_H, batch_tile), lambda i: (0, i))
    weight_specs = [pl.BlockSpec(w.shape, lambda i: (0, 0)) for w in packed]

    out_t = pl.pallas_call(
        picnn_kernel,
        out_shape=jax.ShapeDtypeStruct((OUTPUT_DIM_H, b_final), jnp.float32),
        grid_spec=pltpu.PrefetchScalarGridSpec(
            num_scalar_prefetch=0,
            grid=grid,
            in_specs=[inp_spec] + weight_specs,
            out_specs=out_spec,
        ),
        compiler_params=pltpu.CompilerParams(
            dimension_semantics=("parallel",),
        ),
    )(inp, *packed)
    return out_t[:, :B].T                         # back to (B, output_dim_h)


# ----------------------------------------------------------------------------
# Pure-JAX reference (matches the PyTorch forward exactly)
# ----------------------------------------------------------------------------
def picnn_reference(x, u, params):
    def lin(h, name):
        W, b = params[name]
        return h @ W.T + b

    relu = lambda t: jnp.maximum(t, 0.0)
    h_u = relu(lin(u, "W0u"))
    h_x = relu(lin(x, "W0h_x"))
    h_u = relu(lin(h_x * h_u, "W1xu") + lin(h_u, "W1h_u") + lin(u, "W1u"))
    h_x = relu(lin(h_x, "W1h_x"))
    h_u = relu(lin(h_x * h_u, "W2xu") + lin(h_u, "W2h_u") + lin(u, "W2u"))
    h_x = relu(lin(h_x, "W2h_x"))
    h_u = relu(lin(h_x * h_u, "W3xu") + lin(h_u, "W3h_u") + lin(u, "W3u"))
    h_x = relu(lin(h_x, "W3h_x"))
    h_u = relu(lin(h_x * h_u, "W4xu") + lin(h_u, "W4h_u") + lin(u, "W4u"))
    return h_u


if __name__ == "__main__":
    key = jax.random.PRNGKey(0)
    k_params, k_x, k_u = jax.random.split(key, 3)

    B = 256  # small demo batch
    params = _init_params(k_params)
    x = jax.random.normal(k_x, (B, INPUT_DIM_X), jnp.float32)
    u = jax.random.normal(k_u, (B, INPUT_DIM_U), jnp.float32)

    packed = pack_params(params)

    out = picnn_forward(x, u, packed)
    out = jax.block_until_ready(out)

    ref = picnn_reference(x, u, params)
    assert out.shape == (B, OUTPUT_DIM_H)
    max_err = jnp.max(jnp.abs(out - ref))
    assert jnp.allclose(out, ref, atol=1e-4, rtol=1e-4), f"max abs err {max_err}"

    print("KERNEL_OK")
</pallas_src>

<mosaic_0001>
module attributes {stable_mosaic.version = 11 : i64} {
  func.func @picnn_kernel(%arg0: i32, %arg1: memref<8x256xf32, #tpu.memory_space<vmem>>, %arg2: memref<32x8xf32, #tpu.memory_space<vmem>>, %arg3: memref<48x24xf32, #tpu.memory_space<vmem>>, %arg4: memref<48x32xf32, #tpu.memory_space<vmem>>, %arg5: memref<96x32xf32, #tpu.memory_space<vmem>>, %arg6: memref<96x48xf32, #tpu.memory_space<vmem>>, %arg7: memref<32x56xf32, #tpu.memory_space<vmem>>, %arg8: memref<32x96xf32, #tpu.memory_space<vmem>>, %arg9: memref<8x24xf32, #tpu.memory_space<vmem>>, %arg10: memref<8x32xf32, #tpu.memory_space<vmem>>, %arg11: memref<2x256xf32, #tpu.memory_space<vmem>>) attributes {dimension_semantics = [#tpu.dimension_semantics<parallel>], iteration_bounds = array<i64: 1>, scalar_prefetch = 0 : i64, scratch_operands = 0 : i64, tpu.core_type = #tpu.core_type<tc>, window_params = [{transform_indices = @transform_0, window_bounds = array<i64: 8, 256>}, {pipeline_mode = #tpu.pipeline_mode<synchronous>, transform_indices = @transform_1, window_bounds = array<i64: 32, 8>}, {pipeline_mode = #tpu.pipeline_mode<synchronous>, transform_indices = @transform_2, window_bounds = array<i64: 48, 24>}, {pipeline_mode = #tpu.pipeline_mode<synchronous>, transform_indices = @transform_3, window_bounds = array<i64: 48, 32>}, {pipeline_mode = #tpu.pipeline_mode<synchronous>, transform_indices = @transform_4, window_bounds = array<i64: 96, 32>}, {pipeline_mode = #tpu.pipeline_mode<synchronous>, transform_indices = @transform_5, window_bounds = array<i64: 96, 48>}, {pipeline_mode = #tpu.pipeline_mode<synchronous>, transform_indices = @transform_6, window_bounds = array<i64: 32, 56>}, {pipeline_mode = #tpu.pipeline_mode<synchronous>, transform_indices = @transform_7, window_bounds = array<i64: 32, 96>}, {pipeline_mode = #tpu.pipeline_mode<synchronous>, transform_indices = @transform_8, window_bounds = array<i64: 8, 24>}, {pipeline_mode = #tpu.pipeline_mode<synchronous>, transform_indices = @transform_9, window_bounds = array<i64: 8, 32>}, {transform_indices = @transform_10, window_bounds = array<i64: 2, 256>}]} {
    %c0 = arith.constant 0 : index
    %c0_0 = arith.constant 0 : index
    %0 = vector.load %arg1[%c0, %c0_0] : memref<8x256xf32, #tpu.memory_space<vmem>>, vector<8x256xf32>
    %c0_1 = arith.constant 0 : index
    %c0_2 = arith.constant 0 : index
    %1 = vector.load %arg2[%c0_1, %c0_2] : memref<32x8xf32, #tpu.memory_space<vmem>>, vector<32x8xf32>
    %cst = arith.constant dense<0.000000e+00> : vector<32x256xf32>
    %2 = tpu.matmul %1, %0, %cst {dimension_numbers = #tpu.dot_dimension_numbers<[1], [0], [0], [1], [0, 0, 1, 1], [], []>} : vector<32x8xf32>, vector<8x256xf32>, vector<32x256xf32> -> vector<32x256xf32>
    %cst_3 = arith.constant 0.000000e+00 : f32
    %3 = vector.broadcast %cst_3 : f32 to vector<32x256xf32>
    %4 = arith.maximumf %2, %3 : vector<32x256xf32>
    %5 = vector.extract_strided_slice %4 {offsets = [16, 0], sizes = [16, 256], strides = [1, 1]} : vector<32x256xf32> to vector<16x256xf32>
    %6 = vector.extract_strided_slice %4 {offsets = [0, 0], sizes = [16, 256], strides = [1, 1]} : vector<32x256xf32> to vector<16x256xf32>
    %7 = arith.mulf %5, %6 : vector<16x256xf32>
    %8 = tpu.concatenate %7, %0 in 0 : vector<16x256xf32>, vector<8x256xf32> -> vector<24x256xf32>
    %c0_4 = arith.constant 0 : index
    %c0_5 = arith.constant 0 : index
    %9 = vector.load %arg3[%c0_4, %c0_5] : memref<48x24xf32, #tpu.memory_space<vmem>>, vector<48x24xf32>
    %cst_6 = arith.constant dense<0.000000e+00> : vector<48x256xf32>
    %10 = tpu.matmul %9, %8, %cst_6 {dimension_numbers = #tpu.dot_dimension_numbers<[1], [0], [0], [1], [0, 0, 1, 1], [], []>} : vector<48x24xf32>, vector<24x256xf32>, vector<48x256xf32> -> vector<48x256xf32>
    %c0_7 = arith.constant 0 : index
    %c0_8 = arith.constant 0 : index
    %11 = vector.load %arg4[%c0_7, %c0_8] : memref<48x32xf32, #tpu.memory_space<vmem>>, vector<48x32xf32>
    %cst_9 = arith.constant dense<0.000000e+00> : vector<48x256xf32>
    %12 = tpu.matmul %11, %4, %cst_9 {dimension_numbers = #tpu.dot_dimension_numbers<[1], [0], [0], [1], [0, 0, 1, 1], [], []>} : vector<48x32xf32>, vector<32x256xf32>, vector<48x256xf32> -> vector<48x256xf32>
    %13 = arith.addf %10, %12 : vector<48x256xf32>
    %cst_10 = arith.constant 0.000000e+00 : f32
    %14 = vector.broadcast %cst_10 : f32 to vector<48x256xf32>
    %15 = arith.maximumf %13, %14 : vector<48x256xf32>
    %16 = vector.extract_strided_slice %15 {offsets = [24, 0], sizes = [24, 256], strides = [1, 1]} : vector<48x256xf32> to vector<24x256xf32>
    %17 = vector.extract_strided_slice %15 {offsets = [0, 0], sizes = [24, 256], strides = [1, 1]} : vector<48x256xf32> to vector<24x256xf32>
    %18 = arith.mulf %16, %17 : vector<24x256xf32>
    %19 = tpu.concatenate %18, %0 in 0 : vector<24x256xf32>, vector<8x256xf32> -> vector<32x256xf32>
    %c0_11 = arith.constant 0 : index
    %c0_12 = arith.constant 0 : index
    %20 = vector.load %arg5[%c0_11, %c0_12] : memref<96x32xf32, #tpu.memory_space<vmem>>, vector<96x32xf32>
    %cst_13 = arith.constant dense<0.000000e+00> : vector<96x256xf32>
    %21 = tpu.matmul %20, %19, %cst_13 {dimension_numbers = #tpu.dot_dimension_numbers<[1], [0], [0], [1], [0, 0, 1, 1], [], []>} : vector<96x32xf32>, vector<32x256xf32>, vector<96x256xf32> -> vector<96x256xf32>
    %c0_14 = arith.constant 0 : index
    %c0_15 = arith.constant 0 : index
    %22 = vector.load %arg6[%c0_14, %c0_15] : memref<96x48xf32, #tpu.memory_space<vmem>>, vector<96x48xf32>
    %cst_16 = arith.constant dense<0.000000e+00> : vector<96x256xf32>
    %23 = tpu.matmul %22, %15, %cst_16 {dimension_numbers = #tpu.dot_dimension_numbers<[1], [0], [0], [1], [0, 0, 1, 1], [], []>} : vector<96x48xf32>, vector<48x256xf32>, vector<96x256xf32> -> vector<96x256xf32>
    %24 = arith.addf %21, %23 : vector<96x256xf32>
    %cst_17 = arith.constant 0.000000e+00 : f32
    %25 = vector.broadcast %cst_17 : f32 to vector<96x256xf32>
    %26 = arith.maximumf %24, %25 : vector<96x256xf32>
    %27 = vector.extract_strided_slice %26 {offsets = [48, 0], sizes = [48, 256], strides = [1, 1]} : vector<96x256xf32> to vector<48x256xf32>
    %28 = vector.extract_strided_slice %26 {offsets = [0, 0], sizes = [48, 256], strides = [1, 1]} : vector<96x256xf32> to vector<48x256xf32>
    %29 = arith.mulf %27, %28 : vector<48x256xf32>
    %30 = tpu.concatenate %29, %0 in 0 : vector<48x256xf32>, vector<8x256xf32> -> vector<56x256xf32>
    %c0_18 = arith.constant 0 : index
    %c0_19 = arith.constant 0 : index
    %31 = vector.load %arg7[%c0_18, %c0_19] : memref<32x56xf32, #tpu.memory_space<vmem>>, vector<32x56xf32>
    %cst_20 = arith.constant dense<0.000000e+00> : vector<32x256xf32>
    %32 = tpu.matmul %31, %30, %cst_20 {dimension_numbers = #tpu.dot_dimension_numbers<[1], [0], [0], [1], [0, 0, 1, 1], [], []>} : vector<32x56xf32>, vector<56x256xf32>, vector<32x256xf32> -> vector<32x256xf32>
    %c0_21 = arith.constant 0 : index
    %c0_22 = arith.constant 0 : index
    %33 = vector.load %arg8[%c0_21, %c0_22] : memref<32x96xf32, #tpu.memory_space<vmem>>, vector<32x96xf32>
    %cst_23 = arith.constant dense<0.000000e+00> : vector<32x256xf32>
    %34 = tpu.matmul %33, %26, %cst_23 {dimension_numbers = #tpu.dot_dimension_numbers<[1], [0], [0], [1], [0, 0, 1, 1], [], []>} : vector<32x96xf32>, vector<96x256xf32>, vector<32x256xf32> -> vector<32x256xf32>
    %35 = arith.addf %32, %34 : vector<32x256xf32>
    %cst_24 = arith.constant 0.000000e+00 : f32
    %36 = vector.broadcast %cst_24 : f32 to vector<32x256xf32>
    %37 = arith.maximumf %35, %36 : vector<32x256xf32>
    %38 = vector.extract_strided_slice %37 {offsets = [16, 0], sizes = [16, 256], strides = [1, 1]} : vector<32x256xf32> to vector<16x256xf32>
    %39 = vector.extract_strided_slice %37 {offsets = [0, 0], sizes = [16, 256], strides = [1, 1]} : vector<32x256xf32> to vector<16x256xf32>
    %40 = arith.mulf %38, %39 : vector<16x256xf32>
    %41 = tpu.concatenate %40, %0 in 0 : vector<16x256xf32>, vector<8x256xf32> -> vector<24x256xf32>
    %c0_25 = arith.constant 0 : index
    %c0_26 = arith.constant 0 : index
    %42 = vector.load %arg9[%c0_25, %c0_26] : memref<8x24xf32, #tpu.memory_space<vmem>>, vector<8x24xf32>
    %cst_27 = arith.constant dense<0.000000e+00> : vector<8x256xf32>
    %43 = tpu.matmul %42, %41, %cst_27 {dimension_numbers = #tpu.dot_dimension_numbers<[1], [0], [0], [1], [0, 0, 1, 1], [], []>} : vector<8x24xf32>, vector<24x256xf32>, vector<8x256xf32> -> vector<8x256xf32>
    %c0_28 = arith.constant 0 : index
    %c0_29 = arith.constant 0 : index
    %44 = vector.load %arg10[%c0_28, %c0_29] : memref<8x32xf32, #tpu.memory_space<vmem>>, vector<8x32xf32>
    %cst_30 = arith.constant dense<0.000000e+00> : vector<8x256xf32>
    %45 = tpu.matmul %44, %37, %cst_30 {dimension_numbers = #tpu.dot_dimension_numbers<[1], [0], [0], [1], [0, 0, 1, 1], [], []>} : vector<8x32xf32>, vector<32x256xf32>, vector<8x256xf32> -> vector<8x256xf32>
    %46 = arith.addf %43, %45 : vector<8x256xf32>
    %cst_31 = arith.constant 0.000000e+00 : f32
    %47 = vector.broadcast %cst_31 : f32 to vector<8x256xf32>
    %48 = arith.maximumf %46, %47 : vector<8x256xf32>
    %49 = vector.extract_strided_slice %48 {offsets = [0, 0], sizes = [2, 256], strides = [1, 1]} : vector<8x256xf32> to vector<2x256xf32>
    %c0_32 = arith.constant 0 : index
    %c0_33 = arith.constant 0 : index
    %50 = vector.load %arg11[%c0_32, %c0_33] : memref<2x256xf32, #tpu.memory_space<vmem>>, vector<2x256xf32>
    tpu.vector_store %arg11[%c0_32, %c0_33], %49 {strides = array<i32>} : memref<2x256xf32, #tpu.memory_space<vmem>>, vector<2x256xf32>,
    return
  }
  func.func @transform_0(%arg0: i32) -> (i32, i32) {
    %c0_i32 = arith.constant 0 : i32
    %c0_i32_0 = arith.constant 0 : i32
    return %c0_i32, %arg0 : i32, i32
  }
  func.func @transform_1(%arg0: i32) -> (i32, i32) {
    %c0_i32 = arith.constant 0 : i32
    %c0_i32_0 = arith.constant 0 : i32
    %c0_i32_1 = arith.constant 0 : i32
    return %c0_i32, %c0_i32_0 : i32, i32
  }
  func.func @transform_2(%arg0: i32) -> (i32, i32) {
    %c0_i32 = arith.constant 0 : i32
    %c0_i32_0 = arith.constant 0 : i32
    %c0_i32_1 = arith.constant 0 : i32
    return %c0_i32, %c0_i32_0 : i32, i32
  }
  func.func @transform_3(%arg0: i32) -> (i32, i32) {
    %c0_i32 = arith.constant 0 : i32
    %c0_i32_0 = arith.constant 0 : i32
    %c0_i32_1 = arith.constant 0 : i32
    return %c0_i32, %c0_i32_0 : i32, i32
  }
  func.func @transform_4(%arg0: i32) -> (i32, i32) {
    %c0_i32 = arith.constant 0 : i32
    %c0_i32_0 = arith.constant 0 : i32
    %c0_i32_1 = arith.constant 0 : i32
    return %c0_i32, %c0_i32_0 : i32, i32
  }
  func.func @transform_5(%arg0: i32) -> (i32, i32) {
    %c0_i32 = arith.constant 0 : i32
    %c0_i32_0 = arith.constant 0 : i32
    %c0_i32_1 = arith.constant 0 : i32
    return %c0_i32, %c0_i32_0 : i32, i32
  }
  func.func @transform_6(%arg0: i32) -> (i32, i32) {
    %c0_i32 = arith.constant 0 : i32
    %c0_i32_0 = arith.constant 0 : i32
    %c0_i32_1 = arith.constant 0 : i32
    return %c0_i32, %c0_i32_0 : i32, i32
  }
  func.func @transform_7(%arg0: i32) -> (i32, i32) {
    %c0_i32 = arith.constant 0 : i32
    %c0_i32_0 = arith.constant 0 : i32
    %c0_i32_1 = arith.constant 0 : i32
    return %c0_i32, %c0_i32_0 : i32, i32
  }
  func.func @transform_8(%arg0: i32) -> (i32, i32) {
    %c0_i32 = arith.constant 0 : i32
    %c0_i32_0 = arith.constant 0 : i32
    %c0_i32_1 = arith.constant 0 : i32
    return %c0_i32, %c0_i32_0 : i32, i32
  }
  func.func @transform_9(%arg0: i32) -> (i32, i32) {
    %c0_i32 = arith.constant 0 : i32
    %c0_i32_0 = arith.constant 0 : i32
    %c0_i32_1 = arith.constant 0 : i32
    return %c0_i32, %c0_i32_0 : i32, i32
  }
  func.func @transform_10(%arg0: i32) -> (i32, i32) {
    %c0_i32 = arith.constant 0 : i32
    %c0_i32_0 = arith.constant 0 : i32
    return %c0_i32, %arg0 : i32, i32
  }
}

</mosaic_0001>

<bundles_post_ra>
// kernel: picnn_forward.1
= control target key start
LH: loop header
LB: loop body
LE: loop exit
PB: predicated region body
PF: predicated region fallthrough
CT: control target
= control target key end

     0   :  { %vm42_vm0 = vcmask 64512   ;;  %v1438_v3 = vmov 0.0   ;;  %s1773_s0 = inlined_call_operand.vmem [shape: f32[8,256], index: 0, kind: input, shape index: {}]   ;;  %s1774_s1 = inlined_call_operand.vmem [shape: f32[32,8], index: 1, kind: input, shape index: {}]   ;;  %s1775_s2 = inlined_call_operand.vmem [shape: f32[48,24], index: 2, kind: input, shape index: {}]   ;;  %s1776_s3 = inlined_call_operand.vmem [shape: f32[48,32], index: 3, kind: input, shape index: {}]   ;;  %s1777_s4 = inlined_call_operand.vmem [shape: f32[96,32], index: 4, kind: input, shape index: {}]   ;;  %s1778_s5 = inlined_call_operand.vmem [shape: f32[96,48], index: 5, kind: input, shape index: {}]   ;;  %s1779_s6 = inlined_call_operand.vmem [shape: f32[32,56], index: 6, kind: input, shape index: {}]   ;;  %s1780_s7 = inlined_call_operand.vmem [shape: f32[32,96], index: 7, kind: input, shape index: {}]   ;;  %s1781_s8 = inlined_call_operand.vmem [shape: f32[8,24], index: 8, kind: input, shape index: {}]   ;;  %s1782_s9 = inlined_call_operand.vmem [shape: f32[8,32], index: 9, kind: input, shape index: {}]   ;;  %s1783_s10 = inlined_call_operand.hbm [shape: f32[2,256], index: 10, kind: output, shape index: {}]  }
   0x1   :  { %v1498_v0 = vld [vmem:[%s1773_s0 + $0x8] sm:$0xff]  ;;  %v1503_v1 = vld [vmem:[%s1773_s0] sm:$0xff]  ;;  %119 = vmatprep.mubr.f32.mxu1 %v1438_v3  ;;  %551 = vmatprep.mubr.f32.mxu0 %v1438_v3 }
   0x2   :  { %v38_v2 = vld [vmem:[%s1774_s1] sm:$0xff]  ;;  %55 = vmatprep.subr.mxu1 %v1498_v0 }
   0x3   :  { %56 = vmatpush1.msra.mxu1 %v1503_v1 }
   0x4   :  { %15 = vsyncpa [#allocation3], 0  ;;  %1235 = vmatmul.mubr.msk.f32.vlgmr.msra.gmra.mrb[0].mxu1 %vm42_vm0, %v38_v2  ;;  %v39_v4 = vld [vmem:[%s1774_s1 + $0x8] sm:$0xff]  ;;  %v40_v5 = vld [vmem:[%s1774_s1 + $0x10] sm:$0xff]  ;;  %vm168_vm1 = vcmask 261120   ;;  %vm288_vm2 = vcmask 195584  }
   0x5   :  { %125 = vmatprep.mubr.f32.mxu1 %v1438_v3  ;;  %v41_v6 = vld [vmem:[%s1774_s1 + $0x18] sm:$0xff]  ;;  %v162_v33 = vld [vmem:[%s1776_s3] sm:$0xff]  ;;  %v163_v34 = vld [vmem:[%s1776_s3 + $0x8] sm:$0xff]  ;;  %vm450_vm3 = vcmask 392192   ;;  %vm841_vm4 = vcmask 785408   ;;  %vm943_vm5 = vcmask 457728  }
   0x6   :  { %v164_v35 = vld [vmem:[%s1776_s3 + $0x10] sm:$0xff]  ;;  %v165_v36 = vld [vmem:[%s1776_s3 + $0x18] sm:$0xff]  ;;  %v166_v37 = vld [vmem:[%s1776_s3 + $0x20] sm:$0xff] }
   0x7   :  { %v167_v38 = vld [vmem:[%s1776_s3 + $0x28] sm:$0xff]  ;;  %v156_v39 = vld [vmem:[%s1775_s2] sm:$0xff]  ;;  %v158_v41 = vld [vmem:[%s1775_s2 + $0x10] sm:$0xff] }
   0x8   :  { %1236 = vmatmul.mubr.msk.f32.gmra.mrb[2].mxu1 %vm42_vm0, %v39_v4  ;;  %v157_v40 = vld [vmem:[%s1775_s2 + $0x8] sm:$0xff]  ;;  %v159_v42 = vld [vmem:[%s1775_s2 + $0x18] sm:$0xff]  ;;  %v160_v43 = vld [vmem:[%s1775_s2 + $0x20] sm:$0xff] }
   0x9   :  { %131 = vmatprep.mubr.f32.mxu1 %v1438_v3  ;;  %v161_v44 = vld [vmem:[%s1775_s2 + $0x28] sm:$0xff] }
   0xc   :  { %1237 = vmatmul.mubr.msk.f32.gmra.mrb[4].mxu1 %vm42_vm0, %v40_v5 }
   0xd   :  { %137 = vmatprep.mubr.f32.mxu1 %v1438_v3 }
  0x10   :  { %1238 = vmatmul.mubr.msk.f32.gmra.mrb[6].mxu1 %vm42_vm0, %v41_v6 }
  0x11   :  { %251 = vmatprep.mubr.f32.mxu1 %v1438_v3 }
  0xd7   :  { %v121_v7 = vpop.f32.mrb[0].mxu1 }
  0xd8   :  { %v123_v8 = vpop.f32.mrb[1].mxu1  ;;  %v144_v10 = vmax.f32 %v121_v7, 0.0 }
  0xd9   :  { %v145_v13 = vmax.f32 %v123_v8, 0.0 }
  0xdb   :  { %v127_v9 = vpop.f32.mrb[2].mxu1 }
  0xdc   :  { %v146_v11 = vmax.f32 %v127_v9, 0.0  ;;  %v129_v12 = vpop.f32.mrb[3].mxu1 }
  0xdd   :  { %v147_v14 = vmax.f32 %v129_v12, 0.0 }
  0xde   :  { %v1288_v15 = vpack.c.bf16 %v146_v11, %v144_v10 }
  0xdf   :  { %v1286_v16 = vpack.c.bf16 %v147_v14, %v145_v13  ;;  %v133_v17 = vpop.f32.mrb[4].mxu1 }
  0xe0   :  { %v148_v18 = vmax.f32 %v133_v17, 0.0  ;;  %v135_v19 = vpop.f32.mrb[5].mxu1 }
  0xe1   :  { %v149_v20 = vmax.f32 %v135_v19, 0.0  ;;  %1287 = vmatprep.subr.bf16.mxu1 %v1286_v16 }
  0xe2   :  { %v152_v21 = vmul.f32 %v148_v18, %v144_v10  ;;  %1289 = vmatpush1.bf16.msra.mxu1 %v1288_v15 }
  0xe3   :  { %v153_v22 = vmul.f32 %v149_v20, %v145_v13  ;;  %v139_v23 = vpop.f32.mrb[6].mxu1 }
  0xe4   :  { %v150_v24 = vmax.f32 %v139_v23, 0.0  ;;  %v141_v25 = vpop.f32.mrb[7].mxu1 }
  0xe5   :  { %v151_v26 = vmax.f32 %v141_v25, 0.0 }
  0xe6   :  { %v154_v27 = vmul.f32 %v150_v24, %v146_v11  ;;  %v1292_v28 = vpack.c.bf16 %v150_v24, %v148_v18  ;;  %v439_v24 = vld [vmem:[%s1778_s5 + $0x8] sm:$0xff] }
  0xe7   :  { %v155_v29 = vmul.f32 %v151_v26, %v147_v14  ;;  %v1290_v30 = vpack.c.bf16 %v151_v26, %v149_v20  ;;  %v440_v26 = vld [vmem:[%s1778_s5 + $0x10] sm:$0xff] }
  0xe8   :  { %v1296_v31 = vpack.c.bf16 %v154_v27, %v152_v21  ;;  %v441_v27 = vld [vmem:[%s1778_s5 + $0x18] sm:$0xff] }
  0xe9   :  { %1291 = vmatprep.subr.bf16.mxu1 %v1290_v30  ;;  %v1294_v32 = vpack.c.bf16 %v155_v29, %v153_v22  ;;  %v438_v22 = vld [vmem:[%s1778_s5] sm:$0xff]  ;;  %v443_v29 = vld [vmem:[%s1778_s5 + $0x28] sm:$0xff]  ;;  %v444_v30 = vld [vmem:[%s1778_s5 + $0x30] sm:$0xff] }
  0xea   :  { %1293 = vmatpush1.bf16.msra.mxu1 %v1292_v28  ;;  %v442_v28 = vld [vmem:[%s1778_s5 + $0x20] sm:$0xff] }
  0xeb   :  { %1295 = vmatprep.subr.bf16.mxu1 %v1294_v32  ;;  %v446_v32 = vld [vmem:[%s1778_s5 + $0x40] sm:$0xff] }
  0xed   :  { %1239 = vmatmul.mubr.msk.f32.vlgmr.msra.gmra.mrb[8].mxu1 %vm168_vm1, %v162_v33  ;;  %v447_v33 = vld [vmem:[%s1778_s5 + $0x48] sm:$0xff] }
  0xee   :  { %1297 = vmatpush1.bf16.msra.mxu1 %v1296_v31  ;;  %257 = vmatprep.mubr.f32.mxu1 %v1438_v3  ;;  %v445_v31 = vld [vmem:[%s1778_s5 + $0x38] sm:$0xff] }
  0xef   :  { %311 = vmatprep.subr.mxu1 %v1498_v0 }
  0xf1   :  { %1240 = vmatmul.mubr.msk.f32.gmra.mrb[10].mxu1 %vm168_vm1, %v163_v34  ;;  %v448_v34 = vld [vmem:[%s1778_s5 + $0x50] sm:$0xff] }
  0xf2   :  { %263 = vmatprep.mubr.f32.mxu1 %v1438_v3  ;;  %312 = vmatpush1.msra.mxu1 %v1503_v1 }
  0xf5   :  { %1241 = vmatmul.mubr.msk.f32.gmra.mrb[12].mxu1 %vm168_vm1, %v164_v35  ;;  %v449_v35 = vld [vmem:[%s1778_s5 + $0x58] sm:$0xff] }
  0xf6   :  { %269 = vmatprep.mubr.f32.mxu1 %v1438_v3 }
  0xf9   :  { %1242 = vmatmul.mubr.msk.f32.gmra.mrb[14].mxu1 %vm168_vm1, %v165_v36  ;;  %v426_v36 = vld [vmem:[%s1777_s4] sm:$0xff] }
  0xfa   :  { %275 = vmatprep.mubr.f32.mxu1 %v1438_v3 }
  0xfd   :  { %1243 = vmatmul.mubr.msk.f32.gmra.mrb[16].mxu1 %vm168_vm1, %v166_v37  ;;  %v427_v37 = vld [vmem:[%s1777_s4 + $0x8] sm:$0xff] }
  0xfe   :  { %281 = vmatprep.mubr.f32.mxu1 %v1438_v3 }
 0x101   :  { %1244 = vmatmul.mubr.msk.f32.gmra.mrb[18].mxu1 %vm168_vm1, %v167_v38  ;;  %v428_v38 = vld [vmem:[%s1777_s4 + $0x10] sm:$0xff] }
 0x102   :  { %371 = vmatprep.mubr.f32.mxu1 %v1438_v3 }
 0x105   :  { %1245 = vmatmul.mubr.msk.f32.vlgmr.msra.gmra.mrb[8].mxu1 %vm288_vm2, %v156_v39  ;;  %v429_v39 = vld [vmem:[%s1777_s4 + $0x18] sm:$0xff] }
 0x106   :  { %377 = vmatprep.mubr.f32.mxu1 %v1438_v3 }
 0x109   :  { %1246 = vmatmul.mubr.msk.f32.gmra.mrb[10].mxu1 %vm288_vm2, %v157_v40  ;;  %v430_v40 = vld [vmem:[%s1777_s4 + $0x20] sm:$0xff] }
 0x10a   :  { %383 = vmatprep.mubr.f32.mxu1 %v1438_v3 }
 0x10d   :  { %1247 = vmatmul.mubr.msk.f32.gmra.mrb[12].mxu1 %vm288_vm2, %v158_v41  ;;  %v431_v41 = vld [vmem:[%s1777_s4 + $0x28] sm:$0xff] }
 0x10e   :  { %389 = vmatprep.mubr.f32.mxu1 %v1438_v3 }
 0x111   :  { %1248 = vmatmul.mubr.msk.f32.gmra.mrb[14].mxu1 %vm288_vm2, %v159_v42  ;;  %v432_v42 = vld [vmem:[%s1777_s4 + $0x30] sm:$0xff] }
 0x112   :  { %395 = vmatprep.mubr.f32.mxu1 %v1438_v3 }
 0x115   :  { %1249 = vmatmul.mubr.msk.f32.gmra.mrb[16].mxu1 %vm288_vm2, %v160_v43  ;;  %v433_v43 = vld [vmem:[%s1777_s4 + $0x38] sm:$0xff] }
 0x116   :  { %401 = vmatprep.mubr.f32.mxu1 %v1438_v3 }
 0x119   :  { %1250 = vmatmul.mubr.msk.f32.gmra.mrb[18].mxu1 %vm288_vm2, %v161_v44  ;;  %v434_v44 = vld [vmem:[%s1777_s4 + $0x40] sm:$0xff] }
 0x11a   :  { %918 = vmatprep.mubr.f32.mxu1 %v1438_v3 }
 0x1d8   :  { %v373_v45 = vpop.f32.mrb[8].mxu1 }
 0x1d9   :  { %v375_v46 = vpop.f32.mrb[9].mxu1  ;;  %v408_v48 = vmax.f32 %v373_v45, 0.0  ;;  %v435_v45 = vld [vmem:[%s1777_s4 + $0x48] sm:$0xff] }
 0x1da   :  { %v409_v51 = vmax.f32 %v375_v46, 0.0  ;;  %v436_v46 = vld [vmem:[%s1777_s4 + $0x50] sm:$0xff] }
 0x1dc   :  { %v379_v47 = vpop.f32.mrb[10].mxu1 }
 0x1dd   :  { %v410_v49 = vmax.f32 %v379_v47, 0.0  ;;  %v381_v50 = vpop.f32.mrb[11].mxu1  ;;  %v437_v47 = vld [vmem:[%s1777_s4 + $0x58] sm:$0xff] }
 0x1de   :  { %v411_v52 = vmax.f32 %v381_v50, 0.0 }
 0x1df   :  { %v1300_v53 = vpack.c.bf16 %v410_v49, %v408_v48 }
 0x1e0   :  { %v385_v54 = vpop.f32.mrb[12].mxu1  ;;  %v1298_v55 = vpack.c.bf16 %v411_v52, %v409_v51 }
 0x1e1   :  { %v387_v56 = vpop.f32.mrb[13].mxu1  ;;  %v412_v58 = vmax.f32 %v385_v54, 0.0 }
 0x1e2   :  { %1299 = vmatprep.subr.bf16.mxu0 %v1298_v55  ;;  %v413_v61 = vmax.f32 %v387_v56, 0.0 }
 0x1e3   :  { %1301 = vmatpush1.bf16.msra.mxu0 %v1300_v53 }
 0x1e4   :  { %v391_v57 = vpop.f32.mrb[14].mxu1 }
 0x1e5   :  { %v414_v59 = vmax.f32 %v391_v57, 0.0  ;;  %v393_v60 = vpop.f32.mrb[15].mxu1 }
 0x1e6   :  { %v415_v62 = vmax.f32 %v393_v60, 0.0 }
 0x1e7   :  { %v420_v63 = vmul.f32 %v414_v59, %v408_v48  ;;  %v1304_v2 = vpack.c.bf16 %v414_v59, %v412_v58 }
 0x1e8   :  { %v421_v4 = vmul.f32 %v415_v62, %v409_v51  ;;  %v1302_v5 = vpack.c.bf16 %v415_v62, %v413_v61  ;;  %v397_v6 = vpop.f32.mrb[16].mxu1 }
 0x1e9   :  { %v416_v7 = vmax.f32 %v397_v6, 0.0  ;;  %v399_v8 = vpop.f32.mrb[17].mxu1 }
 0x1ea   :  { %v417_v9 = vmax.f32 %v399_v8, 0.0  ;;  %1303 = vmatprep.subr.bf16.mxu0 %v1302_v5 }
 0x1eb   :  { %v422_v10 = vmul.f32 %v416_v7, %v410_v49  ;;  %1305 = vmatpush1.bf16.msra.mxu0 %v1304_v2 }
 0x1ec   :  { %v423_v11 = vmul.f32 %v417_v9, %v411_v52  ;;  %v403_v12 = vpop.f32.mrb[18].mxu1 }
 0x1ed   :  { %v1312_v13 = vpack.c.bf16 %v422_v10, %v420_v63  ;;  %v418_v14 = vmax.f32 %v403_v12, 0.0  ;;  %v405_v15 = vpop.f32.mrb[19].mxu1 }
 0x1ee   :  { %v419_v16 = vmax.f32 %v405_v15, 0.0  ;;  %v1310_v17 = vpack.c.bf16 %v423_v11, %v421_v4 }
 0x1ef   :  { %v424_v18 = vmul.f32 %v418_v14, %v412_v58  ;;  %v1308_v19 = vpack.c.bf16 %v418_v14, %v416_v7 }
 0x1f0   :  { %v425_v20 = vmul.f32 %v419_v16, %v413_v61  ;;  %v1306_v21 = vpack.c.bf16 %v419_v16, %v417_v9 }
 0x1f1   :  { %v1316_v25 = vpack.c.bf16 %v1503_v1, %v424_v18 }
 0x1f2   :  { %1307 = vmatprep.subr.bf16.mxu0 %v1306_v21  ;;  %v1314_v23 = vpack.c.bf16 %v1498_v0, %v425_v20 }
 0x1f3   :  { %1309 = vmatpush1.bf16.msra.mxu0 %v1308_v19 }
 0x1f4   :  { %1311 = vmatprep.subr.bf16.mxu0 %v1310_v17 }
 0x1f6   :  { %1251 = vmatmul.mubr.msk.f32.vlgmr.msra.gmra.mrb[0].mxu0 %vm450_vm3, %v438_v22 }
 0x1f7   :  { %1313 = vmatpush1.bf16.msra.mxu0 %v1312_v13  ;;  %557 = vmatprep.mubr.f32.mxu0 %v1438_v3 }
 0x1f8   :  { %1315 = vmatprep.subr.bf16.mxu0 %v1314_v23 }
 0x1fa   :  { %1252 = vmatmul.mubr.msk.f32.gmra.mrb[2].mxu0 %vm450_vm3, %v439_v24 }
 0x1fb   :  { %1317 = vmatpush1.bf16.msra.mxu0 %v1316_v25  ;;  %563 = vmatprep.mubr.f32.mxu0 %v1438_v3 }
 0x1fe   :  { %1253 = vmatmul.mubr.msk.f32.gmra.mrb[4].mxu0 %vm450_vm3, %v440_v26 }
 0x1ff   :  { %569 = vmatprep.mubr.f32.mxu0 %v1438_v3 }
 0x202   :  { %1254 = vmatmul.mubr.msk.f32.gmra.mrb[6].mxu0 %vm450_vm3, %v441_v27 }
 0x203   :  { %575 = vmatprep.mubr.f32.mxu0 %v1438_v3 }
 0x206   :  { %1255 = vmatmul.mubr.msk.f32.gmra.mrb[8].mxu0 %vm450_vm3, %v442_v28 }
 0x207   :  { %581 = vmatprep.mubr.f32.mxu0 %v1438_v3 }
 0x20a   :  { %1256 = vmatmul.mubr.msk.f32.gmra.mrb[10].mxu0 %vm450_vm3, %v443_v29 }
 0x20b   :  { %587 = vmatprep.mubr.f32.mxu0 %v1438_v3 }
 0x20e   :  { %1257 = vmatmul.mubr.msk.f32.gmra.mrb[12].mxu0 %vm450_vm3, %v444_v30 }
 0x20f   :  { %593 = vmatprep.mubr.f32.mxu0 %v1438_v3 }
 0x212   :  { %1258 = vmatmul.mubr.msk.f32.gmra.mrb[14].mxu0 %vm450_vm3, %v445_v31 }
 0x213   :  { %599 = vmatprep.mubr.f32.mxu0 %v1438_v3 }
 0x216   :  { %1259 = vmatmul.mubr.msk.f32.gmra.mrb[16].mxu0 %vm450_vm3, %v446_v32 }
 0x217   :  { %605 = vmatprep.mubr.f32.mxu0 %v1438_v3 }
 0x21a   :  { %1260 = vmatmul.mubr.msk.f32.gmra.mrb[18].mxu0 %vm450_vm3, %v447_v33 }
 0x21b   :  { %611 = vmatprep.mubr.f32.mxu0 %v1438_v3 }
 0x21e   :  { %1261 = vmatmul.mubr.msk.f32.gmra.mrb[20].mxu0 %vm450_vm3, %v448_v34 }
 0x21f   :  { %617 = vmatprep.mubr.f32.mxu0 %v1438_v3 }
 0x222   :  { %1262 = vmatmul.mubr.msk.f32.gmra.mrb[22].mxu0 %vm450_vm3, %v449_v35 }
 0x223   :  { %724 = vmatprep.mubr.f32.mxu0 %v1438_v3 }
 0x226   :  { %1263 = vmatmul.mubr.msk.f32.vlgmr.msra.gmra.mrb[0].mxu0 %vm168_vm1, %v426_v36 }
 0x227   :  { %730 = vmatprep.mubr.f32.mxu0 %v1438_v3 }
 0x22a   :  { %1264 = vmatmul.mubr.msk.f32.gmra.mrb[2].mxu0 %vm168_vm1, %v427_v37 }
 0x22b   :  { %736 = vmatprep.mubr.f32.mxu0 %v1438_v3 }
 0x22e   :  { %1265 = vmatmul.mubr.msk.f32.gmra.mrb[4].mxu0 %vm168_vm1, %v428_v38 }
 0x22f   :  { %742 = vmatprep.mubr.f32.mxu0 %v1438_v3 }
 0x232   :  { %1266 = vmatmul.mubr.msk.f32.gmra.mrb[6].mxu0 %vm168_vm1, %v429_v39 }
 0x233   :  { %748 = vmatprep.mubr.f32.mxu0 %v1438_v3 }
 0x236   :  { %1267 = vmatmul.mubr.msk.f32.gmra.mrb[8].mxu0 %vm168_vm1, %v430_v40 }
 0x237   :  { %754 = vmatprep.mubr.f32.mxu0 %v1438_v3 }
 0x23a   :  { %1268 = vmatmul.mubr.msk.f32.gmra.mrb[10].mxu0 %vm168_vm1, %v431_v41 }
 0x23b   :  { %760 = vmatprep.mubr.f32.mxu0 %v1438_v3 }
 0x23e   :  { %1269 = vmatmul.mubr.msk.f32.gmra.mrb[12].mxu0 %vm168_vm1, %v432_v42 }
 0x23f   :  { %766 = vmatprep.mubr.f32.mxu0 %v1438_v3 }
 0x242   :  { %1270 = vmatmul.mubr.msk.f32.gmra.mrb[14].mxu0 %vm168_vm1, %v433_v43 }
 0x243   :  { %772 = vmatprep.mubr.f32.mxu0 %v1438_v3 }
 0x246   :  { %1271 = vmatmul.mubr.msk.f32.gmra.mrb[16].mxu0 %vm168_vm1, %v434_v44 }
 0x247   :  { %778 = vmatprep.mubr.f32.mxu0 %v1438_v3 }
 0x24a   :  { %1272 = vmatmul.mubr.msk.f32.gmra.mrb[18].mxu0 %vm168_vm1, %v435_v45 }
 0x24b   :  { %784 = vmatprep.mubr.f32.mxu0 %v1438_v3 }
 0x24e   :  { %1273 = vmatmul.mubr.msk.f32.gmra.mrb[20].mxu0 %vm168_vm1, %v436_v46 }
 0x24f   :  { %790 = vmatprep.mubr.f32.mxu0 %v1438_v3 }
 0x252   :  { %1274 = vmatmul.mubr.msk.f32.gmra.mrb[22].mxu0 %vm168_vm1, %v437_v47 }
 0x2f9   :  { %v726_v48 = vpop.f32.mrb[0].mxu0 }
 0x2fa   :  { %v728_v49 = vpop.f32.mrb[1].mxu0  ;;  %v797_v51 = vmax.f32 %v726_v48, 0.0 }
 0x2fb   :  { %v798_v54 = vmax.f32 %v728_v49, 0.0 }
 0x2fd   :  { %v732_v50 = vpop.f32.mrb[2].mxu0 }
 0x2fe   :  { %v799_v52 = vmax.f32 %v732_v50, 0.0  ;;  %v734_v53 = vpop.f32.mrb[3].mxu0 }
 0x2ff   :  { %v800_v55 = vmax.f32 %v734_v53, 0.0 }
 0x300   :  { %v1320_v56 = vpack.c.bf16 %v799_v52, %v797_v51 }
 0x301   :  { %v1318_v57 = vpack.c.bf16 %v800_v55, %v798_v54  ;;  %v738_v58 = vpop.f32.mrb[4].mxu0 }
 0x302   :  { %v740_v59 = vpop.f32.mrb[5].mxu0  ;;  %v801_v61 = vmax.f32 %v738_v58, 0.0 }
 0x303   :  { %1319 = vmatprep.subr.bf16.mxu1 %v1318_v57  ;;  %v802_v2 = vmax.f32 %v740_v59, 0.0 }
 0x304   :  { %1321 = vmatpush1.bf16.msra.mxu1 %v1320_v56 }
 0x305   :  { %v744_v60 = vpop.f32.mrb[6].mxu0 }
 0x306   :  { %v803_v62 = vmax.f32 %v744_v60, 0.0  ;;  %v746_v63 = vpop.f32.mrb[7].mxu0 }
 0x307   :  { %v804_v4 = vmax.f32 %v746_v63, 0.0 }
 0x308   :  { %v1324_v5 = vpack.c.bf16 %v803_v62, %v801_v61 }
 0x309   :  { %v1322_v6 = vpack.c.bf16 %v804_v4, %v802_v2  ;;  %v750_v7 = vpop.f32.mrb[8].mxu0 }
 0x30a   :  { %v752_v8 = vpop.f32.mrb[9].mxu0  ;;  %v805_v10 = vmax.f32 %v750_v7, 0.0  ;;  %v840_v7 = vld [vmem:[%s1780_s7 + $0x18] sm:$0xff] }
 0x30b   :  { %1323 = vmatprep.subr.bf16.mxu1 %v1322_v6  ;;  %v806_v13 = vmax.f32 %v752_v8, 0.0  ;;  %v839_v6 = vld [vmem:[%s1780_s7 + $0x10] sm:$0xff]  ;;  %v833_v8 = vld [vmem:[%s1779_s6] sm:$0xff] }
 0x30c   :  { %1325 = vmatpush1.bf16.msra.mxu1 %v1324_v5  ;;  %v838_v5 = vld [vmem:[%s1780_s7 + $0x8] sm:$0xff] }
 0x30d   :  { %v756_v9 = vpop.f32.mrb[10].mxu0 }
 0x30e   :  { %v807_v11 = vmax.f32 %v756_v9, 0.0  ;;  %v758_v12 = vpop.f32.mrb[11].mxu0  ;;  %v834_v9 = vld [vmem:[%s1779_s6 + $0x8] sm:$0xff] }
 0x30f   :  { %v808_v14 = vmax.f32 %v758_v12, 0.0 }
 0x310   :  { %v1328_v15 = vpack.c.bf16 %v807_v11, %v805_v10 }
 0x311   :  { %v1326_v16 = vpack.c.bf16 %v808_v14, %v806_v13  ;;  %v762_v17 = vpop.f32.mrb[12].mxu0 }
 0x312   :  { %v809_v18 = vmax.f32 %v762_v17, 0.0  ;;  %v764_v19 = vpop.f32.mrb[13].mxu0 }
 0x313   :  { %v810_v20 = vmax.f32 %v764_v19, 0.0  ;;  %1327 = vmatprep.subr.bf16.mxu1 %v1326_v16 }
 0x314   :  { %v821_v21 = vmul.f32 %v809_v18, %v797_v51  ;;  %1329 = vmatpush1.bf16.msra.mxu1 %v1328_v15 }
 0x315   :  { %v822_v22 = vmul.f32 %v810_v20, %v798_v54  ;;  %v768_v23 = vpop.f32.mrb[14].mxu0 }
 0x316   :  { %v811_v24 = vmax.f32 %v768_v23, 0.0  ;;  %v770_v25 = vpop.f32.mrb[15].mxu0 }
 0x317   :  { %v812_v26 = vmax.f32 %v770_v25, 0.0 }
 0x318   :  { %v823_v27 = vmul.f32 %v811_v24, %v799_v52  ;;  %v1332_v28 = vpack.c.bf16 %v811_v24, %v809_v18 }
 0x319   :  { %v824_v29 = vmul.f32 %v812_v26, %v800_v55  ;;  %v1330_v30 = vpack.c.bf16 %v812_v26, %v810_v20  ;;  %v774_v31 = vpop.f32.mrb[16].mxu0 }
 0x31a   :  { %v1344_v32 = vpack.c.bf16 %v823_v27, %v821_v21  ;;  %v813_v33 = vmax.f32 %v774_v31, 0.0  ;;  %v776_v34 = vpop.f32.mrb[17].mxu0 }
 0x31b   :  { %v814_v35 = vmax.f32 %v776_v34, 0.0  ;;  %1331 = vmatprep.subr.bf16.mxu1 %v1330_v30  ;;  %v1342_v36 = vpack.c.bf16 %v824_v29, %v822_v22 }
 0x31c   :  { %v825_v37 = vmul.f32 %v813_v33, %v801_v61  ;;  %1333 = vmatpush1.bf16.msra.mxu1 %v1332_v28 }
 0x31d   :  { %v826_v38 = vmul.f32 %v814_v35, %v802_v2  ;;  %v780_v39 = vpop.f32.mrb[18].mxu0 }
 0x31e   :  { %v815_v40 = vmax.f32 %v780_v39, 0.0  ;;  %v782_v41 = vpop.f32.mrb[19].mxu0  ;;  %v1057_v39 = vld [vmem:[%s1781_s8] sm:$0xff] }
 0x31f   :  { %v816_v42 = vmax.f32 %v782_v41, 0.0 }
 0x320   :  { %v827_v43 = vmul.f32 %v815_v40, %v803_v62  ;;  %v1336_v44 = vpack.c.bf16 %v815_v40, %v813_v33 }
 0x321   :  { %v828_v45 = vmul.f32 %v816_v42, %v804_v4  ;;  %v1334_v46 = vpack.c.bf16 %v816_v42, %v814_v35  ;;  %v786_v47 = vpop.f32.mrb[20].mxu0  ;;  %v837_v4 = vld [vmem:[%s1780_s7] sm:$0xff] }
 0x322   :  { %v1348_v48 = vpack.c.bf16 %v827_v43, %v825_v37  ;;  %v817_v49 = vmax.f32 %v786_v47, 0.0  ;;  %v788_v50 = vpop.f32.mrb[21].mxu0 }
 0x323   :  { %v818_v51 = vmax.f32 %v788_v50, 0.0  ;;  %1335 = vmatprep.subr.bf16.mxu1 %v1334_v46  ;;  %v1346_v52 = vpack.c.bf16 %v828_v45, %v826_v38  ;;  %v1058_v38 = vld [vmem:[%s1782_s9] sm:$0xff]  ;;  %s1439_s9 = smov [#allocation2]  }
 0x324   :  { %v829_v53 = vmul.f32 %v817_v49, %v805_v10  ;;  %1337 = vmatpush1.bf16.msra.mxu1 %v1336_v44  ;;  %v835_v10 = vld [vmem:[%s1779_s6 + $0x10] sm:$0xff]  ;;  %s1227_s18 = sshll.u32 %s1439_s9, 4  ;;  %s1228_s18 = int_to_ptr.vmem [resolvable:$true] %s1227_s18 }
 0x325   :  { %v830_v54 = vmul.f32 %v818_v51, %v806_v13  ;;  %v792_v55 = vpop.f32.mrb[22].mxu0  ;;  %s1414_s3 = scalar_lea.vmem %s1228_s18, 64  ;;  %p1419_p1 = scmp.lt.s32.totalorder %s1228_s18, %s1228_s18 }
 0x326   :  { %v819_v56 = vmax.f32 %v792_v55, 0.0  ;;  %v794_v57 = vpop.f32.mrb[23].mxu0  ;;  %p1415_p0 = scmp.ne.s32.totalorder %s1228_s18, %s1414_s3  ;;  %p1420_p2 = scmp.lt.s32.totalorder %s1414_s3, %s1414_s3 }
 0x327   :  { %v820_v58 = vmax.f32 %v794_v57, 0.0 }
 0x328   :  { %v831_v59 = vmul.f32 %v819_v56, %v807_v11  ;;  %v1340_v60 = vpack.c.bf16 %v819_v56, %v817_v49  ;;  %v836_v11 = vld [vmem:[%s1779_s6 + $0x18] sm:$0xff]  ;;  %p1421_p3 = por %p1420_p2, %p1419_p1 }
 0x329   :  { %v832_v61 = vmul.f32 %v820_v58, %v808_v14  ;;  %v1338_v62 = vpack.c.bf16 %v820_v58, %v818_v51 }
 0x32a   :  { %v1352_v63 = vpack.c.bf16 %v831_v59, %v829_v53  ;;  %p1422_p4 = pnand %p1421_p3, %p1415_p0 }
 0x32b   :  { %v1350_v2 = vpack.c.bf16 %v832_v61, %v830_v54  ;;  %1339 = vmatprep.subr.bf16.mxu1 %v1338_v62 }
 0x32c   :  { %1341 = vmatpush1.bf16.msra.mxu1 %v1340_v60 }
 0x32d   :  { %1343 = vmatprep.subr.bf16.mxu1 %v1342_v36 }
 0x32f   :  { %1275 = vmatmul.mubr.msk.f32.vlgmr.msra.gmra.mrb[20].mxu1 %vm841_vm4, %v837_v4 }
 0x330   :  { %1345 = vmatpush1.bf16.msra.mxu1 %v1344_v32  ;;  %924 = vmatprep.mubr.f32.mxu1 %v1438_v3 }
 0x331   :  { %1347 = vmatprep.subr.bf16.mxu1 %v1346_v52 }
 0x333   :  { %1276 = vmatmul.mubr.msk.f32.gmra.mrb[22].mxu1 %vm841_vm4, %v838_v5 }
 0x334   :  { %1349 = vmatpush1.bf16.msra.mxu1 %v1348_v48  ;;  %930 = vmatprep.mubr.f32.mxu1 %v1438_v3 }
 0x335   :  { %1351 = vmatprep.subr.bf16.mxu1 %v1350_v2 }
 0x337   :  { %1277 = vmatmul.mubr.msk.f32.gmra.mrb[24].mxu1 %vm841_vm4, %v839_v6 }
 0x338   :  { %1353 = vmatpush1.bf16.msra.mxu1 %v1352_v63  ;;  %936 = vmatprep.mubr.f32.mxu1 %v1438_v3 }
 0x339   :  { %968 = vmatprep.subr.mxu1 %v1498_v0 }
 0x33b   :  { %1278 = vmatmul.mubr.msk.f32.gmra.mrb[26].mxu1 %vm841_vm4, %v840_v7 }
 0x33c   :  { %969 = vmatpush1.msra.mxu1 %v1503_v1  ;;  %1020 = vmatprep.mubr.f32.mxu1 %v1438_v3 }
 0x33f   :  { %1279 = vmatmul.mubr.msk.f32.vlgmr.msra.gmra.mrb[20].mxu1 %vm943_vm5, %v833_v8 }
 0x340   :  { %1026 = vmatprep.mubr.f32.mxu1 %v1438_v3 }
 0x343   :  { %1280 = vmatmul.mubr.msk.f32.gmra.mrb[22].mxu1 %vm943_vm5, %v834_v9 }
 0x344   :  { %1032 = vmatprep.mubr.f32.mxu1 %v1438_v3 }
 0x347   :  { %1281 = vmatmul.mubr.msk.f32.gmra.mrb[24].mxu1 %vm943_vm5, %v835_v10 }
 0x348   :  { %1038 = vmatprep.mubr.f32.mxu1 %v1438_v3 }
 0x34b   :  { %1282 = vmatmul.mubr.msk.f32.gmra.mrb[26].mxu1 %vm943_vm5, %v836_v11 }
 0x34c   :  { %1126 = vmatprep.mubr.f32.mxu1 %v1438_v3 }
 0x412   :  { %v1022_v12 = vpop.f32.mrb[20].mxu1 }
 0x413   :  { %v1024_v13 = vpop.f32.mrb[21].mxu1  ;;  %v1045_v15 = vmax.f32 %v1022_v12, 0.0 }
 0x414   :  { %v1046_v18 = vmax.f32 %v1024_v13, 0.0 }
 0x416   :  { %v1028_v14 = vpop.f32.mrb[22].mxu1 }
 0x417   :  { %v1047_v16 = vmax.f32 %v1028_v14, 0.0  ;;  %v1030_v17 = vpop.f32.mrb[23].mxu1 }
 0x418   :  { %v1048_v19 = vmax.f32 %v1030_v17, 0.0 }
 0x419   :  { %v1356_v20 = vpack.c.bf16 %v1047_v16, %v1045_v15 }
 0x41a   :  { %v1354_v21 = vpack.c.bf16 %v1048_v19, %v1046_v18  ;;  %v1034_v22 = vpop.f32.mrb[24].mxu1 }
 0x41b   :  { %v1049_v23 = vmax.f32 %v1034_v22, 0.0  ;;  %v1036_v24 = vpop.f32.mrb[25].mxu1 }
 0x41c   :  { %v1050_v25 = vmax.f32 %v1036_v24, 0.0  ;;  %1355 = vmatprep.subr.bf16.mxu1 %v1354_v21 }
 0x41d   :  { %v1053_v26 = vmul.f32 %v1049_v23, %v1045_v15  ;;  %1357 = vmatpush1.bf16.msra.mxu1 %v1356_v20 }
 0x41e   :  { %v1054_v27 = vmul.f32 %v1050_v25, %v1046_v18  ;;  %v1040_v28 = vpop.f32.mrb[26].mxu1 }
 0x41f   :  { %v1051_v29 = vmax.f32 %v1040_v28, 0.0  ;;  %v1042_v30 = vpop.f32.mrb[27].mxu1 }
 0x420   :  { %v1052_v31 = vmax.f32 %v1042_v30, 0.0 }
 0x421   :  { %v1055_v32 = vmul.f32 %v1051_v29, %v1047_v16  ;;  %v1360_v33 = vpack.c.bf16 %v1051_v29, %v1049_v23 }
 0x422   :  { %v1056_v34 = vmul.f32 %v1052_v31, %v1048_v19  ;;  %v1358_v35 = vpack.c.bf16 %v1052_v31, %v1050_v25 }
 0x423   :  { %v1364_v36 = vpack.c.bf16 %v1055_v32, %v1053_v26 }
 0x424   :  { %1359 = vmatprep.subr.bf16.mxu1 %v1358_v35  ;;  %v1362_v37 = vpack.c.bf16 %v1056_v34, %v1054_v27 }
 0x425   :  { %1361 = vmatpush1.bf16.msra.mxu1 %v1360_v33 }
 0x426   :  { %1363 = vmatprep.subr.bf16.mxu1 %v1362_v37 }
 0x428   :  { %1283 = vmatmul.mubr.msk.f32.vlgmr.msra.gmra.mrb[28].mxu1 %vm168_vm1, %v1058_v38 }
 0x429   :  { %1365 = vmatpush1.bf16.msra.mxu1 %v1364_v36  ;;  %1200 = vmatprep.mubr.f32.mxu1 %v1438_v3 }
 0x42a   :  { %1140 = vmatprep.subr.mxu1 %v1498_v0 }
 0x42d   :  { %1141 = vmatpush1.msra.mxu1 %v1503_v1 }
 0x430   :  { %1284 = vmatmul.mubr.msk.f32.vlgmr.msra.gmra.mrb[28].mxu1 %vm288_vm2, %v1057_v39 }
 0x503   :  { %v1202_v40 = vpop.f32.mrb[28].mxu1 }
 0x504   :  { %v1207_v41 = vmax.f32 %v1202_v40, 0.0  ;;  %v1204_v42 = vpop.f32.mrb[29].mxu1 }
 0x505   :  { %v1208_v43 = vmax.f32 %v1204_v42, 0.0 }
 0x507   :  { %v1211_v44 = vcombine.low %v1207_v41, %v1208_v43 }
 0x509   :  { %1285 = vst.sshfl [vmem:[#allocation2] sm:$0x33 pattern:$0x76325410] %v1211_v44 }
 0x50a   :  { %1425 = shalt.err (!%p1422_p4)
}
 0x50b   :  { %s1426_s19 = scalar_lea.hbm %s1783_s10, 64 }
 0x50c   :  { %p1427_p5 = scmp.ne.s32.totalorder %s1783_s10, %s1426_s19  ;;  %p1430_p6 = scmp.lt.u32.totalorder %s1426_s19, %s1783_s10 }
 0x50e   :  { %p1432_p7 = pnand %p1430_p6, %p1427_p5 }
 0x510   :  { %1435 = shalt.err (!%p1432_p7)
}
 0x511   :  { %1230 = dma.vmem_to_hbm [thread:$0]  %s1228_s18, 64, %s1783_s10, [#allocation3]  }
 0x512   :  { %1436 = dma.done.wait [#allocation3], 64  }
 0x513   :  { %1437 = vsyncadd [#allocation3], 4294967232 }
 0x514   :  { %1234 = vsyncpa [#allocation3], 1 }

</bundles_post_ra>
